<compile_context>
chip_gen: v6e
topology: v6e:2x2x1
jax: 0.10.0
libtpu: 0.0.40
codegen_flags: <defaults>
</compile_context>

<pallas_src>
import functools

import jax
import jax.numpy as jnp
from jax.experimental import pallas as pl
from jax.experimental.pallas import tpu as pltpu

LANES = 128
MAX_BLOCK_ROWS = 8192          # (8192, 128) f32 tile = 4 MiB per input
VMEM_LIMIT_BYTES = 48 << 20    # 2 inputs x 2 bufs x 4 MiB = 16 MiB + headroom


def _num_core_splits():
    """2 on chips with 2 TensorCores per device, else 1 (trace-time query)."""
    try:
        kind = jax.devices()[0].device_kind.lower()
    except Exception:
        return 1
    if "v7" in kind or "v4" in kind or "v5p" in kind:
        return 2
    return 1


def _round_up(x, m):
    return (x + m - 1) // m * m


def _vonmises_sum_kernel(kappa_ref, pred_ref, gt_ref, out_ref, *,
                         rows, block_rows, blocks_per_split, need_mask):
    """Accumulates per-split (8, LANES) partial sums of exp(kappa*cos(diff))."""
    c = pl.program_id(0)   # parallel (core) split
    i = pl.program_id(1)   # sequential (reduction) axis

    @pl.when(i == 0)
    def _():
        out_ref[...] = jnp.zeros_like(out_ref)

    kappa = kappa_ref[0]
    diff = pred_ref[...].astype(jnp.float32) - gt_ref[...].astype(jnp.float32)
    # NOTE: "1 - ..." is hoisted to the wrapper (saves a VALU op per vreg on
    # the potentially VALU-bound v7x steady state; free elsewhere).
    val = jnp.exp(kappa * jnp.cos(diff))

    def fold(v):
        # (block_rows, 128) -> (8, 128): vreg-wise VPU adds, no XLU.
        return jnp.sum(v.reshape(block_rows // 8, 8, LANES), axis=0)

    if need_mask:
        b = c * blocks_per_split + i            # un-clamped logical block idx
        is_full = (b + 1) * block_rows <= rows  # block fully in-bounds?

        @pl.when(is_full)
        def _():
            out_ref[...] += fold(val)

        @pl.when(jnp.logical_not(is_full))
        def _():
            # Boundary block (garbage rows past `rows`) or overshoot duplicate
            # block (clamped index_map). The select keeps NaN/Inf from the
            # undefined region out and zeroes duplicate blocks entirely.
            row_ids = b * block_rows + jax.lax.broadcasted_iota(
                jnp.int32, (block_rows, LANES), 0)
            out_ref[...] += fold(jnp.where(row_ids < rows, val, 0.0))
    else:
        out_ref[...] += fold(val)


def von_mises_loss(orientation_pred, orientation_gt, kappa=1.0):
    """Pallas implementation of VonMisesLoss.forward (returns a scalar)."""
    assert orientation_pred.shape == orientation_gt.shape
    # Runtime scalar (lives in SMEM) -> no recompile when kappa changes.
    kappa_arr = jnp.asarray(kappa, jnp.float32).reshape(1)

    pred_flat = orientation_pred.reshape(-1)
    gt_flat = orientation_gt.reshape(-1)
    n = pred_flat.shape[0]

    bulk = (n // LANES) * LANES   # largest lane-aligned prefix
    rows = bulk // LANES

    total = jnp.float32(0.0)

    if rows > 0:
        # Free bitcast when n % 128 == 0. For ragged n the prefix slice may
        # materialize a copy before the custom call (rare non-aligned case);
        # the <128-element tail itself is handled in plain JAX below.
        pred2d = (pred_flat if bulk == n else pred_flat[:bulk]).reshape(rows, LANES)
        gt2d = (gt_flat if bulk == n else gt_flat[:bulk]).reshape(rows, LANES)

        block_rows = min(MAX_BLOCK_ROWS, _round_up(rows, 8))
        n_blocks = pl.cdiv(rows, block_rows)
        num_splits = min(_num_core_splits(), n_blocks)
        blocks_per_split = pl.cdiv(n_blocks, num_splits)
        need_mask = num_splits * blocks_per_split * block_rows != rows
        assert num_splits * blocks_per_split * block_rows >= rows
        assert need_mask == (num_splits * blocks_per_split * block_rows != rows)

        def in_index_map(c, i):
            # Clamp so replicated / overshooting steps re-read a valid block;
            # their contribution is zeroed by the in-kernel mask.
            return (jnp.minimum(c * blocks_per_split + i, n_blocks - 1), 0)

        kernel = functools.partial(
            _vonmises_sum_kernel,
            rows=rows,
            block_rows=block_rows,
            blocks_per_split=blocks_per_split,
            need_mask=need_mask,
        )

        elem_bytes = pred2d.dtype.itemsize + gt2d.dtype.itemsize
        cost = pl.CostEstimate(
            flops=5 * bulk,
            transcendentals=2 * bulk,
            bytes_accessed=elem_bytes * bulk + num_splits * 8 * LANES * 4,
        )

        partials = pl.pallas_call(
            kernel,
            out_shape=jax.ShapeDtypeStruct((num_splits, 8, LANES), jnp.float32),
            grid_spec=pltpu.PrefetchScalarGridSpec(
                num_scalar_prefetch=0,
                grid=(num_splits, blocks_per_split),
                in_specs=[
                    pl.BlockSpec(memory_space=pltpu.MemorySpace.SMEM),  # kappa
                    pl.BlockSpec((block_rows, LANES), in_index_map),
                    pl.BlockSpec((block_rows, LANES), in_index_map),
                ],
                # One resident (8, 128) accumulator block per core split.
                out_specs=pl.BlockSpec((None, 8, LANES), lambda c, i: (c, 0, 0)),
            ),
            compiler_params=pltpu.CompilerParams(
                # "parallel" shards axis 0 across TensorCores on multi-TC
                # chips; if a v7x trace shows one core idle, switch axis 0
                # to pltpu.CORE_PARALLEL.
                dimension_semantics=("parallel", "arbitrary"),
                vmem_limit_bytes=VMEM_LIMIT_BYTES,
            ),
            cost_estimate=cost,
        )(kappa_arr, pred2d, gt2d)

        # sum over the bulk of (1 - exp(.)) == bulk - sum(exp(.)).
        total = total + (jnp.float32(bulk) - jnp.sum(partials))

    if bulk < n:
        # Ragged tail (< 128 elements): negligible work, plain JAX.
        tp = pred_flat[bulk:].astype(jnp.float32)
        tg = gt_flat[bulk:].astype(jnp.float32)
        total = total + jnp.sum(1.0 - jnp.exp(kappa_arr[0] * jnp.cos(tp - tg)))

    mean = total / jnp.float32(n)
    return mean.astype(orientation_pred.dtype)


def von_mises_loss_ref(orientation_pred, orientation_gt, kappa=1.0):
    diff = orientation_pred - orientation_gt
    loss = 1.0 - jnp.exp(kappa * jnp.cos(diff))
    return loss.mean()


if __name__ == "__main__":
    key = jax.random.PRNGKey(0)
    k1, k2, k3, k4 = jax.random.split(key, 4)

    # Main check: orientation maps (batch, channels, H, W), lane-aligned size.
    shape = (2, 4, 16, 16)
    pred = jax.random.uniform(k1, shape, jnp.float32, minval=-3.14159, maxval=3.14159)
    gt = jax.random.uniform(k2, shape, jnp.float32, minval=-3.14159, maxval=3.14159)

    out = jax.block_until_ready(von_mises_loss(pred, gt, kappa=1.0))
    ref = von_mises_loss_ref(pred, gt, kappa=1.0)
    assert jnp.allclose(out, ref, rtol=1e-5, atol=1e-5), (out, ref)

    # Runtime-kappa check (kappa is an SMEM scalar, not a baked-in constant).
    out_k = jax.block_until_ready(von_mises_loss(pred, gt, kappa=2.5))
    ref_k = von_mises_loss_ref(pred, gt, kappa=2.5)
    assert jnp.allclose(out_k, ref_k, rtol=1e-5, atol=1e-5), (out_k, ref_k)

    # Ragged check: exercises the boundary-block mask + plain-JAX tail path.
    shape2 = (2, 3, 41, 7)  # 1722 elements: 13 full lane rows + 58-elem tail
    pred2 = jax.random.uniform(k3, shape2, jnp.float32, minval=-3.14159, maxval=3.14159)
    gt2 = jax.random.uniform(k4, shape2, jnp.float32, minval=-3.14159, maxval=3.14159)

    out2 = jax.block_until_ready(von_mises_loss(pred2, gt2, kappa=1.0))
    ref2 = von_mises_loss_ref(pred2, gt2, kappa=1.0)
    assert jnp.allclose(out2, ref2, rtol=1e-5, atol=1e-5), (out2, ref2)

    print("KERNEL_OK")
</pallas_src>

<mosaic_0001>
module attributes {stable_mosaic.version = 11 : i64} {
  func.func @_vonmises_sum_kernel(%arg0: i32, %arg1: i32, %arg2: memref<1xf32, #tpu.memory_space<smem>>, %arg3: memref<16x128xf32, #tpu.memory_space<vmem>>, %arg4: memref<16x128xf32, #tpu.memory_space<vmem>>, %arg5: memref<1x8x128xf32, #tpu.memory_space<vmem>>) attributes {dimension_semantics = [#tpu.dimension_semantics<parallel>, #tpu.dimension_semantics<arbitrary>], iteration_bounds = array<i64: 1, 1>, scalar_prefetch = 0 : i64, scratch_operands = 0 : i64, tpu.core_type = #tpu.core_type<tc>, window_params = [{transform_indices = @transform_0, window_bounds = array<i64: 1>}, {transform_indices = @transform_1, window_bounds = array<i64: 16, 128>}, {transform_indices = @transform_2, window_bounds = array<i64: 16, 128>}, {transform_indices = @transform_3, window_bounds = array<i64: 1, 8, 128>}]} {
    %c0_i32 = arith.constant 0 : i32
    %0 = arith.cmpi eq, %arg1, %c0_i32 : i32
    %1 = arith.extui %0 : i1 to i32
    %c0_i32_0 = arith.constant 0 : i32
    %2 = arith.cmpi ne, %1, %c0_i32_0 : i32
    scf.if %2 {
      %cst_11 = arith.constant 0.000000e+00 : f32
      %19 = vector.broadcast %cst_11 : f32 to vector<8x128xf32>
      %c0_12 = arith.constant 0 : index
      %c0_13 = arith.constant 0 : index
      %c0_14 = arith.constant 0 : index
      %20 = vector.load %arg5[%c0_12, %c0_13, %c0_14] : memref<1x8x128xf32, #tpu.memory_space<vmem>>, vector<1x8x128xf32>
      %21 = vector.shape_cast %20 : vector<1x8x128xf32> to vector<8x128xf32>
      %22 = vector.shape_cast %19 : vector<8x128xf32> to vector<1x8x128xf32>
      tpu.vector_store %arg5[%c0_12, %c0_13, %c0_14], %22 {strides = array<i32>} : memref<1x8x128xf32, #tpu.memory_space<vmem>>, vector<1x8x128xf32>,
    } else {
    }
    %c0 = arith.constant 0 : index
    %3 = memref.load %arg2[%c0] : memref<1xf32, #tpu.memory_space<smem>>
    %c0_1 = arith.constant 0 : index
    %c0_2 = arith.constant 0 : index
    %4 = vector.load %arg3[%c0_1, %c0_2] : memref<16x128xf32, #tpu.memory_space<vmem>>, vector<16x128xf32>
    %c0_3 = arith.constant 0 : index
    %c0_4 = arith.constant 0 : index
    %5 = vector.load %arg4[%c0_3, %c0_4] : memref<16x128xf32, #tpu.memory_space<vmem>>, vector<16x128xf32>
    %6 = arith.subf %4, %5 : vector<16x128xf32>
    %7 = math.cos %6 : vector<16x128xf32>
    %8 = vector.broadcast %3 : f32 to vector<16x128xf32>
    %9 = arith.mulf %8, %7 : vector<16x128xf32>
    %10 = math.exp %9 : vector<16x128xf32>
    %c0_5 = arith.constant 0 : index
    %c0_6 = arith.constant 0 : index
    %c0_7 = arith.constant 0 : index
    %11 = vector.load %arg5[%c0_5, %c0_6, %c0_7] : memref<1x8x128xf32, #tpu.memory_space<vmem>>, vector<1x8x128xf32>
    %12 = vector.shape_cast %11 : vector<1x8x128xf32> to vector<8x128xf32>
    %13 = vector.shape_cast %10 : vector<16x128xf32> to vector<2x8x128xf32>
    %cst = arith.constant dense<0.000000e+00> : vector<8x128xf32>
    %14 = vector.multi_reduction <add>, %13, %cst [0] : vector<2x8x128xf32> to vector<8x128xf32>
    %15 = arith.addf %12, %14 : vector<8x128xf32>
    %c0_8 = arith.constant 0 : index
    %c0_9 = arith.constant 0 : index
    %c0_10 = arith.constant 0 : index
    %16 = vector.load %arg5[%c0_8, %c0_9, %c0_10] : memref<1x8x128xf32, #tpu.memory_space<vmem>>, vector<1x8x128xf32>
    %17 = vector.shape_cast %16 : vector<1x8x128xf32> to vector<8x128xf32>
    %18 = vector.shape_cast %15 : vector<8x128xf32> to vector<1x8x128xf32>
    tpu.vector_store %arg5[%c0_8, %c0_9, %c0_10], %18 {strides = array<i32>} : memref<1x8x128xf32, #tpu.memory_space<vmem>>, vector<1x8x128xf32>,
    return
  }
  func.func @transform_0(%arg0: i32, %arg1: i32) -> i32 {
    %c0_i32 = arith.constant 0 : i32
    %c0_i32_0 = arith.constant 0 : i32
    return %c0_i32 : i32
  }
  func.func @transform_1(%arg0: i32, %arg1: i32) -> (i32, i32) {
    %c1_i32 = arith.constant 1 : i32
    %0 = arith.muli %arg0, %c1_i32 : i32
    %1 = arith.addi %0, %arg1 : i32
    %c0_i32 = arith.constant 0 : i32
    %2 = arith.minsi %1, %c0_i32 : i32
    %c0_i32_0 = arith.constant 0 : i32
    %c0_i32_1 = arith.constant 0 : i32
    return %2, %c0_i32_0 : i32, i32
  }
  func.func @transform_2(%arg0: i32, %arg1: i32) -> (i32, i32) {
    %c1_i32 = arith.constant 1 : i32
    %0 = arith.muli %arg0, %c1_i32 : i32
    %1 = arith.addi %0, %arg1 : i32
    %c0_i32 = arith.constant 0 : i32
    %2 = arith.minsi %1, %c0_i32 : i32
    %c0_i32_0 = arith.constant 0 : i32
    %c0_i32_1 = arith.constant 0 : i32
    return %2, %c0_i32_0 : i32, i32
  }
  func.func @transform_3(%arg0: i32, %arg1: i32) -> (i32, i32, i32) {
    %c0_i32 = arith.constant 0 : i32
    %c0_i32_0 = arith.constant 0 : i32
    %c0_i32_1 = arith.constant 0 : i32
    return %arg0, %c0_i32, %c0_i32_0 : i32, i32, i32
  }
}

</mosaic_0001>

<bundles_post_ra>
// kernel: tpu_custom_call.1
= control target key start
LH: loop header
LB: loop body
LE: loop exit
PB: predicated region body
PF: predicated region fallthrough
CT: control target
= control target key end

     0   :  { %9 = vsyncpa [#allocation4], 0  ;;  %s548_s0 = inlined_call_operand.<no memory space> [shape: f32[1], index: 0, kind: input, shape index: {}]   ;;  %s549_s1 = inlined_call_operand.hbm [shape: f32[16,128], index: 1, kind: input, shape index: {}]   ;;  %s550_s2 = inlined_call_operand.hbm [shape: f32[16,128], index: 2, kind: input, shape index: {}]   ;;  %s551_s3 = inlined_call_operand.hbm [shape: f32[1,8,128], index: 3, kind: output, shape index: {}]  }
   0x1   :  { %10 = vsyncpa [#allocation7], 0 }
   0x2   :  { %11 = vsyncpa [#allocation5], 0  ;;  %s419_s12 = smov [#allocation3]  }
   0x3   :  { %s25_s13 = sshll.u32 %s419_s12, 4  ;;  %s26_s13 = int_to_ptr.vmem [resolvable:$true] %s25_s13 }
   0x4   :  { %s361_s14 = scalar_lea.vmem %s26_s13, 256  ;;  %p366_p1 = scmp.lt.s32.totalorder %s26_s13, %s26_s13 }
   0x5   :  { %p362_p0 = scmp.ne.s32.totalorder %s26_s13, %s361_s14  ;;  %p367_p2 = scmp.lt.s32.totalorder %s361_s14, %s361_s14 }
   0x7   :  { %p368_p3 = por %p367_p2, %p366_p1 }
   0x9   :  { %p369_p4 = pnand %p368_p3, %p362_p0 }
   0xb   :  { %372 = shalt.err (!%p369_p4)
}
   0xc   :  { %s420_s15 = smov 128   ;;  %s421_s16 = smov 8  }
   0xd   :  { %31 = dma.hbm_to_vmem [thread:$0]  %s549_s1, 256, %s26_s13, [#allocation4], %s420_s15, %s420_s15, %s421_s16  }
   0xe   :  { %s422_s19 = smov [#allocation6]  }
   0xf   :  { %s43_s20 = sshll.u32 %s422_s19, 4  ;;  %s44_s20 = int_to_ptr.vmem [resolvable:$true] %s43_s20 }
  0x10   :  { %s381_s21 = scalar_lea.vmem %s44_s20, 256  ;;  %p386_p6 = scmp.lt.s32.totalorder %s44_s20, %s44_s20 }
  0x11   :  { %p382_p5 = scmp.ne.s32.totalorder %s44_s20, %s381_s21  ;;  %p387_p7 = scmp.lt.s32.totalorder %s381_s21, %s381_s21 }
  0x13   :  { %p388_p8 = por %p387_p7, %p386_p6 }
  0x15   :  { %p389_p9 = pnand %p388_p8, %p382_p5 }
  0x17   :  { %392 = shalt.err (!%p389_p9)
}
  0x18   :  { %49 = dma.hbm_to_vmem [thread:$0]  %s550_s2, 256, %s44_s20, [#allocation7], %s420_s15, %s420_s15, %s421_s16  }
  0x19   :  { %413 = dma.done.wait [#allocation4], 256  }
  0x1a   :  { %414 = vsyncadd [#allocation4], 4294967040 }
  0x1b   :  { %415 = dma.done.wait [#allocation7], 256  }
  0x1c   :  { %416 = vsyncadd [#allocation7], 4294967040  ;;  %v70_v0 = vld [vmem:[#allocation3] sm:$0xff]  ;;  %v71_v1 = vld [vmem:[#allocation3 + $0x8] sm:$0xff]  ;;  %v423_v28 = vmov 683565275  }
  0x1d   :  { %v72_v2 = vld [vmem:[#allocation6] sm:$0xff]  ;;  %v73_v3 = vld [vmem:[#allocation6 + $0x8] sm:$0xff]  ;;  %v424_v30 = vmov 2475754826   ;;  %v425_v32 = vmov 2131351028  }
  0x1e   :  { %v456_v4 = vsub.f32 %v70_v0, %v72_v2  ;;  %v458_v5 = vsub.f32 %v71_v1, %v73_v3  ;;  %v426_v34 = vmov 2102212464   ;;  %v427_v36 = vmov 920167782  }
  0x1f   :  { %v428_v44 = vmov 1326507024  }
  0x20   :  { %v76_v6 = vand.u32 2147483647, %v456_v4  ;;  %v79_v7 = vand.u32 2139095040, %v456_v4  ;;  %v179_v8 = vand.u32 2147483647, %v458_v5  ;;  %v182_v9 = vand.u32 2139095040, %v458_v5 }
  0x21   :  { %vm78_vm14 = vcmp.lt.s32.totalorder %v456_v4, 0 }
  0x22   :  { %v80_v10 = vshrl.u32 %v79_v7, 23  ;;  %v83_v11 = vand.u32 8388607, %v76_v6  ;;  %v183_v12 = vshrl.u32 %v182_v9, 23  ;;  %v186_v13 = vand.u32 8388607, %v179_v8 }
  0x23   :  { %vm519_vm15 = vcmp.le.f32.partialorder %v76_v6, 0.7853982 }
  0x24   :  { %v313_v14 = vadd.s32 4294967169, %v80_v10  ;;  %v317_v15 = vadd.s32 4294967169, %v183_v12  ;;  %v84_v17 = vor.u32 8388608, %v83_v11  ;;  %v187_v18 = vor.u32 8388608, %v186_v13 }
  0x26   :  { %v86_v16 = vadd.s32 1, %v313_v14  ;;  %v189_v19 = vadd.s32 1, %v317_v15  ;;  %v468_v24 = vshll.u32 %v84_v17, 8  ;;  %v470_v26 = vshll.u32 %v187_v18, 8 }
  0x28   :  { %vm87_vm0 = vcmp.gt.s32.totalorder %v86_v16, 0  ;;  %vm190_vm1 = vcmp.gt.s32.totalorder %v189_v19, 0 }
  0x29   :  { %v88_v20 = vsel %vm87_vm0, %v86_v16, 0  ;;  %v191_v23 = vsel %vm190_vm1, %v189_v19, 0  ;;  %vm181_vm0 = vcmp.lt.s32.totalorder %v458_v5, 0  ;;  %vm529_vm1 = vcmp.le.f32.partialorder %v179_v8, 0.7853982 }
  0x2a   :  { %v89_v21 = vshrl.u32 %v88_v20, 5  ;;  %v90_v22 = vand.u32 31, %v88_v20  ;;  %v193_v25 = vand.u32 31, %v191_v23  ;;  %v472_v38 = vshrl.u32 %v191_v23, 5 }
  0x2c   :  { %v91_v27 = vsub.s32 32, %v90_v22  ;;  %v93_v29 = vshll.u32 %v423_v28, %v90_v22  ;;  %v96_v31 = vshll.u32 %v424_v30, %v90_v22  ;;  %v99_v33 = vshll.u32 %v425_v32, %v90_v22 }
  0x2d   :  { %v102_v35 = vshll.u32 %v426_v34, %v90_v22  ;;  %v105_v37 = vshll.u32 %v427_v36, %v90_v22  ;;  %vm108_vm2 = vcmp.lt.s32.totalorder %v89_v21, 1  ;;  %vm109_vm3 = vcmp.lt.s32.totalorder %v89_v21, 2 }
  0x2e   :  { %v92_v39 = vshrl.u32 %v423_v28, %v91_v27  ;;  %v94_v40 = vshrl.u32 %v424_v30, %v91_v27  ;;  %v97_v41 = vshrl.u32 %v425_v32, %v91_v27  ;;  %v100_v42 = vshrl.u32 %v426_v34, %v91_v27 }
  0x2f   :  { %v103_v43 = vshrl.u32 %v427_v36, %v91_v27  ;;  %v106_v45 = vshrl.u32 %v428_v44, %v91_v27  ;;  %vm111_vm4 = vcmp.lt.s32.totalorder %v89_v21, 4  ;;  %v194_v49 = vsub.s32 32, %v193_v25 }
  0x30   :  { %v95_v46 = vor.u32 %v94_v40, %v93_v29  ;;  %v98_v47 = vor.u32 %v97_v41, %v96_v31  ;;  %v101_v48 = vor.u32 %v100_v42, %v99_v33  ;;  %vm110_vm5 = vcmp.lt.s32.totalorder %v89_v21, 3 }
  0x31   :  { %v104_v50 = vor.u32 %v103_v43, %v102_v35  ;;  %v107_v51 = vor.u32 %v106_v45, %v105_v37  ;;  %v196_v52 = vshll.u32 %v423_v28, %v193_v25  ;;  %v199_v60 = vshll.u32 %v424_v30, %v193_v25 }
  0x32   :  { %v112_v53 = vsel %vm108_vm2, %v92_v39, %v95_v46  ;;  %v113_v54 = vsel %vm111_vm4, %v101_v48, 2102212464  ;;  %v116_v55 = vsel %vm108_vm2, %v95_v46, %v98_v47  ;;  %v120_v56 = vsel %vm108_vm2, %v98_v47, %v101_v48 }
  0x33   :  { %v114_v57 = vsel %vm110_vm5, %v98_v47, %v113_v54  ;;  %v117_v58 = vsel %vm111_vm4, %v104_v50, 920167782  ;;  %v121_v59 = vsel %vm111_vm4, %v107_v51, 1326507024  ;;  %v195_v63 = vshrl.u32 %v423_v28, %v194_v49 }
  0x34   :  { %v118_v61 = vsel %vm110_vm5, %v101_v48, %v117_v58  ;;  %v122_v62 = vsel %vm110_vm5, %v104_v50, %v121_v59  ;;  %v197_v0 = vshrl.u32 %v424_v30, %v194_v49  ;;  %v115_v1 = vsel %vm109_vm3, %v112_v53, %v114_v57 }
  0x35   :  { %v119_v2 = vsel %vm109_vm3, %v116_v55, %v118_v61  ;;  %v123_v3 = vsel %vm109_vm3, %v120_v56, %v122_v62  ;;  %v200_v7 = vshrl.u32 %v425_v32, %v194_v49  ;;  %v202_v15 = vshll.u32 %v425_v32, %v193_v25 }
  0x36   :  { %v481_v9 = vmul.u32.u64.low %v468_v24, %v123_v3  ;;  %v482_v10 = vmul.u32.u64.high %v468_v24, %v123_v3, %v481_v9  ;;  %v485_v11 = vmul.u32.u64.low %v468_v24, %v119_v2  ;;  %v486_v12 = vmul.u32.u64.high %v468_v24, %v119_v2, %v485_v11 }
  0x37   :  { %v198_v13 = vor.u32 %v197_v0, %v196_v52  ;;  %v201_v14 = vor.u32 %v200_v7, %v199_v60  ;;  %v203_v16 = vshrl.u32 %v426_v34, %v194_v49  ;;  %v205_v17 = vshll.u32 %v426_v34, %v193_v25 }
  0x38   :  { %v206_v18 = vshrl.u32 %v427_v36, %v194_v49  ;;  %v208_v19 = vshll.u32 %v427_v36, %v193_v25  ;;  %v209_v20 = vshrl.u32 %v428_v44, %v194_v49  ;;  %v131_v21 = vmul.u32 %v468_v24, %v115_v1 }
  0x39   :  { %v204_v22 = vor.u32 %v203_v16, %v202_v15  ;;  %vm211_vm6 = vcmp.lt.s32.totalorder %v472_v38, 1  ;;  %vm212_vm7 = vcmp.lt.s32.totalorder %v472_v38, 2  ;;  %vm133_vm8 = vc.u32 %v482_v10, %v485_v11 }
  0x3a   :  { %v134_v23 = vadd.s32 1, %v486_v12  ;;  %v207_v27 = vor.u32 %v206_v18, %v205_v17  ;;  %vm213_vm9 = vcmp.lt.s32.totalorder %v472_v38, 3  ;;  %v210_v28 = vor.u32 %v209_v20, %v208_v19 }
  0x3b   :  { %vm214_vm10 = vcmp.lt.s32.totalorder %v472_v38, 4  ;;  %v215_v29 = vsel %vm211_vm6, %v195_v63, %v198_v13  ;;  %v219_v25 = vsel %vm211_vm6, %v198_v13, %v201_v14  ;;  %v223_v32 = vsel %vm211_vm6, %v201_v14, %v204_v22 }
  0x3c   :  { %v135_v30 = vsel %vm133_vm8, %v134_v23, %v486_v12  ;;  %v216_v24 = vsel %vm214_vm10, %v204_v22, 2102212464  ;;  %v220_v31 = vsel %vm214_vm10, %v207_v27, 920167782  ;;  %v224_v36 = vsel %vm214_vm10, %v210_v28, 1326507024 }
  0x3d   :  { %v136_v33 = vadd.s32 %v135_v30, %v131_v21  ;;  %v217_v34 = vsel %vm213_vm9, %v201_v14, %v216_v24  ;;  %v221_v35 = vsel %vm213_vm9, %v204_v22, %v220_v31  ;;  %v225_v40 = vsel %vm213_vm9, %v207_v27, %v224_v36 }
  0x3e   :  { %v218_v37 = vsel %vm212_vm7, %v215_v29, %v217_v34  ;;  %v222_v39 = vsel %vm212_vm7, %v219_v25, %v221_v35  ;;  %v226_v42 = vsel %vm212_vm7, %v223_v32, %v225_v40  ;;  %v132_v61 = vadd.s32 %v485_v11, %v482_v10 }
  0x3f   :  { %v137_v41 = vadd.s32 536870912, %v136_v33  ;;  %v503_v43 = vmul.u32.u64.low %v470_v26, %v222_v39  ;;  %v504_v44 = vmul.u32.u64.high %v470_v26, %v222_v39, %v503_v43  ;;  %v234_v48 = vmul.u32 %v470_v26, %v218_v37 }
  0x40   :  { %v507_v45 = vmul.u32.u64.low %v470_v26, %v226_v42  ;;  %v508_v46 = vmul.u32.u64.high %v470_v26, %v226_v42, %v507_v45  ;;  %vm168_vm5 = vweird.f32 %v456_v4  ;;  %vm271_vm9 = vweird.f32 %v458_v5 }
  0x41   :  { %v138_v47 = vshrl.u32 %v137_v41, 30  ;;  %v237_v50 = vadd.s32 1, %v504_v44 }
  0x42   :  { %vm236_vm11 = vc.u32 %v508_v46, %v503_v43  ;;  %v235_v17 = vadd.s32 %v503_v43, %v508_v46 }
  0x43   :  { %v139_v49 = vshll.u32 %v138_v47, 30  ;;  %v238_v38 = vsel %vm236_vm11, %v237_v50, %v504_v44  ;;  %v162_v24 = vsub.s32 4, %v138_v47 }
  0x44   :  { %v239_v52 = vadd.s32 %v238_v38, %v234_v48 }
  0x45   :  { %v140_v51 = vsub.s32 %v136_v33, %v139_v49  ;;  %v163_v35 = vsel %vm78_vm14, %v162_v24, %v138_v47 }
  0x46   :  { %v240_v54 = vadd.s32 536870912, %v239_v52  ;;  %v165_v39 = vsel %vm519_vm15, 0, %v163_v35 }
  0x47   :  { %v142_v53 = vsub.s32 0, %v140_v51  ;;  %v169_v43 = vand.u32 3, %v165_v39 }
  0x48   :  { %v241_v56 = vshrl.u32 %v240_v54, 30 }
  0x49   :  { %v314_v55 = vmin.u32 %v142_v53, %v140_v51  ;;  %vm174_vm2 = vcmp.eq.s32.totalorder %v169_v43, 2  ;;  %vm171_vm3 = vcmp.eq.s32.totalorder %v169_v43, 0  ;;  %vm170_vm4 = vcmp.lt.s32.totalorder %v169_v43, 2 }
  0x4a   :  { %v242_v58 = vshll.u32 %v241_v56, 30  ;;  %v265_v41 = vsub.s32 4, %v241_v56  ;;  %v282_v53 = vstv %s548_s0  ;;  %s429_s0 = smov [#allocation8]  }
  0x4b   :  { %v144_v57 = vclz %v314_v55  ;;  %s299_s24 = sshll.u32 %s429_s0, 4  ;;  %s300_s24 = int_to_ptr.vmem [resolvable:$true] %s299_s24 }
  0x4c   :  { %v243_v60 = vsub.s32 %v239_v52, %v242_v58  ;;  %v266_v44 = vsel %vm181_vm0, %v265_v41, %v241_v56  ;;  %s393_s25 = scalar_lea.vmem %s300_s24, 128  ;;  %p398_p11 = scmp.lt.s32.totalorder %s300_s24, %s300_s24 }
  0x4d   :  { %v315_v59 = vadd.s32 4294967294, %v144_v57  ;;  %v268_v48 = vsel %vm529_vm1, 0, %v266_v44  ;;  %p394_p10 = scmp.ne.s32.totalorder %s300_s24, %s393_s25  ;;  %p399_p12 = scmp.lt.s32.totalorder %s393_s25, %s393_s25 }
  0x4e   :  { %v245_v62 = vsub.s32 0, %v243_v60  ;;  %v272_v38 = vand.u32 3, %v268_v48 }
  0x4f   :  { %vm316_vm12 = vcmp.lt.s32.totalorder %v315_v59, 0  ;;  %p400_p13 = por %p399_p12, %p398_p11 }
  0x50   :  { %v147_v26 = vsel %vm316_vm12, 0, %v315_v59  ;;  %v318_v2 = vmin.u32 %v245_v62, %v243_v60  ;;  %vm277_vm6 = vcmp.eq.s32.totalorder %v272_v38, 2  ;;  %vm274_vm7 = vcmp.eq.s32.totalorder %v272_v38, 0 }
  0x51   :  { %v148_v63 = vsub.s32 32, %v147_v26  ;;  %v149_v0 = vshll.u32 %v140_v51, %v147_v26  ;;  %v152_v1 = vsub.s32 4294967266, %v147_v26  ;;  %vm273_vm8 = vcmp.lt.s32.totalorder %v272_v38, 2  ;;  %p401_p0 = pnand %p400_p13, %p394_p10 }
  0x52   :  { %v247_v9 = vclz %v318_v2 }
  0x53   :  { %v150_v3 = vshrl.u32 %v132_v61, %v148_v63  ;;  %v153_v7 = vadd.s32 127, %v152_v1 }
  0x54   :  { %v319_v14 = vadd.s32 4294967294, %v247_v9 }
  0x55   :  { %v151_v12 = vor.u32 %v150_v3, %v149_v0  ;;  %v154_v13 = vshll.u32 %v153_v7, 23 }
  0x56   :  { %vm320_vm13 = vcmp.lt.s32.totalorder %v319_v14, 0 }
  0x57   :  { %v155_v15 = vor.u32 4788187, %v154_v13  ;;  %v158_v16 = vcvt.s32.f32 %v151_v12  ;;  %v250_v10 = vsel %vm320_vm13, 0, %v319_v14 }
  0x58   :  { %v251_v11 = vsub.s32 32, %v250_v10  ;;  %v252_v19 = vshll.u32 %v243_v60, %v250_v10  ;;  %v255_v20 = vsub.s32 4294967266, %v250_v10 }
  0x59   :  { %v156_v18 = vand.u32 2147483647, %v155_v15 }
  0x5a   :  { %v253_v22 = vshrl.u32 %v235_v17, %v251_v11  ;;  %v256_v23 = vadd.s32 127, %v255_v20 }
  0x5b   :  { %v159_v21 = vmul.f32 %v158_v16, %v156_v18 }
  0x5c   :  { %v254_v29 = vor.u32 %v253_v22, %v252_v19  ;;  %v257_v25 = vshll.u32 %v256_v23, 23 }
  0x5d   :  { %v160_v28 = vxor.u32 2147483648, %v159_v21 }
  0x5e   :  { %v258_v32 = vor.u32 4788187, %v257_v25  ;;  %v261_v33 = vcvt.s32.f32 %v254_v29 }
  0x5f   :  { %v161_v30 = vsel %vm78_vm14, %v160_v28, %v159_v21 }
  0x60   :  { %v164_v31 = vsel %vm519_vm15, %v456_v4, %v161_v30  ;;  %v259_v34 = vand.u32 2147483647, %v258_v32 }
  0x61   :  { %341 = vcosq.f32 %v164_v31 }
  0x62   :  { %343 = vsinq.f32 %v164_v31  ;;  %v262_v36 = vmul.f32 %v261_v33, %v259_v34 }
  0x64   :  { %v263_v37 = vxor.u32 2147483648, %v262_v36 }
  0x66   :  { %v264_v40 = vsel %vm181_vm0, %v263_v37, %v262_v36 }
  0x67   :  { %v267_v42 = vsel %vm529_vm1, %v458_v5, %v264_v40 }
  0x68   :  { %345 = vcosq.f32 %v267_v42 }
  0x69   :  { %347 = vsinq.f32 %v267_v42 }
  0x6e   :  { %v342_v45 = vpop.eup %341 }
  0x6f   :  { %v344_v8 = vpop.eup %343  ;;  %v175_v46 = vxor.u32 2147483648, %v342_v45 }
  0x70   :  { %v172_v47 = vxor.u32 2147483648, %v344_v8 }
  0x71   :  { %v176_v49 = vsel %vm174_vm2, %v175_v46, %v344_v8 }
  0x72   :  { %v173_v50 = vsel %vm171_vm3, %v342_v45, %v172_v47 }
  0x73   :  { %v177_v51 = vsel %vm170_vm4, %v173_v50, %v176_v49 }
  0x74   :  { %v178_v52 = vsel %vm168_vm5, nan, %v177_v51 }
  0x75   :  { %v346_v54 = vpop.eup %345  ;;  %v283_v57 = vmul.f32 %v282_v53, %v178_v52 }
  0x76   :  { %v348_v55 = vpop.eup %347  ;;  %v278_v56 = vxor.u32 2147483648, %v346_v54 }
  0x77   :  { %v275_v58 = vxor.u32 2147483648, %v348_v55  ;;  %v285_v61 = vmul.f32 1.442695, %v283_v57 }
  0x78   :  { %v279_v59 = vsel %vm277_vm6, %v278_v56, %v348_v55 }
  0x79   :  { %v276_v4 = vsel %vm274_vm7, %v346_v54, %v275_v58  ;;  %349 = vpow2.f32 %v285_v61 }
  0x7a   :  { %v280_v60 = vsel %vm273_vm8, %v276_v4, %v279_v59 }
  0x7b   :  { %v281_v26 = vsel %vm271_vm9, nan, %v280_v60 }
  0x7c   :  { %v284_v62 = vmul.f32 %v282_v53, %v281_v26 }
  0x7e   :  { %v287_v63 = vmul.f32 1.442695, %v284_v62 }
  0x80   :  { %351 = vpow2.f32 %v287_v63 }
  0x86   :  { %v350_v0 = vpop.eup %349 }
  0x8d   :  { %v352_v1 = vpop.eup %351 }
  0x8e   :  { %v290_v2 = vadd.f32 %v352_v1, %v350_v0 }
  0x90   :  { %292 = vst [vmem:[#allocation8] sm:$0xff] %v290_v2 }
  0x91   :  { %404 = shalt.err (!%p401_p0)
}
  0x92   :  { %302 = dma.vmem_to_hbm [thread:$0]  %s300_s24, 128, %s551_s3, [#allocation5]  }
  0x93   :  { %417 = dma.done.wait [#allocation5], 128  }
  0x94   :  { %418 = vsyncadd [#allocation5], 4294967168 }
  0x95   :  { %306 = vsyncpa [#allocation4], 1 }
  0x96   :  { %307 = vsyncpa [#allocation7], 1 }
  0x97   :  { %308 = vsyncpa [#allocation5], 1 }

</bundles_post_ra>
